<compile_context>
chip_gen: v7x
topology: tpu7x:2x2x1
jax: 0.10.0
libtpu: 0.0.40
codegen_flags: <defaults>
</compile_context>

<pallas_src>
import functools

import jax
import jax.numpy as jnp
from jax.experimental import pallas as pl
from jax.experimental.pallas import tpu as pltpu


_MIN_TILE = 16  # bf16 sublane packing (also a multiple of 8 for f32)


def _round_up(x, m):
    return ((x + m - 1) // m) * m


def _leaky_relu(h):
    # LeakyReLU(negative_slope=0.01): single VALU max per element.
    return jnp.maximum(h, 0.01 * h)


def _mlp_kernel(x_ref, w1_ref, b1_ref, w2_ref, b2_ref, w3_ref, b3_ref, o_ref):
    """Linear -> LeakyReLU -> Linear -> LeakyReLU -> Linear on one batch tile.

    Matmuls run in the operands' storage dtype (f32 or bf16) with f32
    accumulation on the MXU; bias add and LeakyReLU stay in f32 on the VPU.
    """
    x = x_ref[...]  # (tile_b, d_in), already in the matmul dtype

    h = jnp.dot(x, w1_ref[...], preferred_element_type=jnp.float32) + b1_ref[...]
    h = _leaky_relu(h)

    h = jnp.dot(h.astype(w2_ref.dtype), w2_ref[...],
                preferred_element_type=jnp.float32) + b2_ref[...]
    h = _leaky_relu(h)

    o = jnp.dot(h.astype(w3_ref.dtype), w3_ref[...],
                preferred_element_type=jnp.float32) + b3_ref[...]
    o_ref[...] = o.astype(o_ref.dtype)


@functools.partial(jax.jit, static_argnames=("block_b", "use_bf16"))
def lowest_lod_predictor(x, w1, b1, w2, b2, w3, b3, *, block_b=4096, use_bf16=True):
    """Pallas forward for LowestLODPredictor.

    x:  (B, input_dim) any float dtype (the module does x.to(float32))
    w1: (input_dim, hidden),  b1: (1, hidden)
    w2: (hidden, hidden),     b2: (1, hidden)
    w3: (hidden, output_dim), b3: (1, output_dim)
    returns (B, output_dim) float32
    """
    B, d_in = x.shape
    hidden = w1.shape[1]
    d_out = w3.shape[1]

    # Matmul operand dtype. bf16 halves x/weight HBM+VMEM traffic and hits
    # MXU bf16 peak; f32 gives bit-faithful parity with the PyTorch forward.
    mm_dtype = jnp.bfloat16 if use_bf16 else jnp.float32

    # Match x.to(torch.float32), then (optionally) down-cast once in the
    # wrapper so the kernel reads the narrow dtype directly from HBM.
    x = x.astype(jnp.float32).astype(mm_dtype)
    w1 = w1.astype(mm_dtype)
    w2 = w2.astype(mm_dtype)
    w3 = w3.astype(mm_dtype)
    # Biases stay f32 (bias add + LeakyReLU run in f32 on the VPU; v5e-safe).
    b1 = b1.astype(jnp.float32)
    b2 = b2.astype(jnp.float32)
    b3 = b3.astype(jnp.float32)

    # ---- batch tiling: big tiles at large B, >=2 grid steps at mid-size B so
    # the "parallel" batch axis shards across both v7x TensorCores.
    block_b = _round_up(max(block_b, _MIN_TILE), _MIN_TILE)
    if B > block_b:
        tile_b = block_b
    elif B >= 2 * _MIN_TILE:
        tile_b = _round_up(pl.cdiv(B, 2), _MIN_TILE)   # >= 2 grid steps
    else:
        tile_b = _round_up(max(B, 1), _MIN_TILE)       # single small tile

    Bp = _round_up(B, tile_b)
    if Bp != B:
        x = jnp.pad(x, ((0, Bp - B), (0, 0)))
    grid = (Bp // tile_b,)

    # Advisory cost hint for XLA scheduling around this tiny custom call.
    itemsize = jnp.dtype(mm_dtype).itemsize
    flops = 2 * Bp * (d_in * hidden + hidden * hidden + hidden * d_out)
    bytes_accessed = (
        Bp * d_in * itemsize                      # x read
        + Bp * d_out * 4                          # output write (f32)
        + (d_in * hidden + hidden * hidden + hidden * d_out) * itemsize  # W
        + (2 * hidden + d_out) * 4                # biases
    )
    cost = pl.CostEstimate(flops=flops, transcendentals=0,
                           bytes_accessed=bytes_accessed)

    out = pl.pallas_call(
        _mlp_kernel,
        out_shape=jax.ShapeDtypeStruct((Bp, d_out), jnp.float32),
        grid=grid,
        in_specs=[
            # batch tile of activations
            pl.BlockSpec((tile_b, d_in), lambda i: (i, 0)),
            # weights / biases: full arrays with constant index_map -> DMA'd
            # once and VMEM-resident across all batch tiles.
            pl.BlockSpec((d_in, hidden), lambda i: (0, 0)),
            pl.BlockSpec((1, hidden), lambda i: (0, 0)),
            pl.BlockSpec((hidden, hidden), lambda i: (0, 0)),
            pl.BlockSpec((1, hidden), lambda i: (0, 0)),
            pl.BlockSpec((hidden, d_out), lambda i: (0, 0)),
            pl.BlockSpec((1, d_out), lambda i: (0, 0)),
        ],
        # (tile_b, d_out) out block: last dim equals the full array's last
        # dim, so it's legal; no lane padding, no writeback inflation.
        out_specs=pl.BlockSpec((tile_b, d_out), lambda i: (i, 0)),
        compiler_params=pltpu.CompilerParams(
            # Batch axis is embarrassingly parallel -> shards across the two
            # TensorCores on v7x when the grid has >= 2 steps.
            dimension_semantics=("parallel",),
        ),
        cost_estimate=cost,
    )(x, w1, b1, w2, b2, w3, b3)

    # Strip batch padding (padded rows contain bias-derived garbage).
    return out[:B]


def _init_linear(key, fan_in, fan_out):
    """Deterministic init mimicking nn.Linear's uniform(-1/sqrt(fan_in), ...)."""
    kw, kb = jax.random.split(key)
    bound = 1.0 / jnp.sqrt(jnp.float32(fan_in))
    w = jax.random.uniform(kw, (fan_in, fan_out), jnp.float32, -bound, bound)
    b = jax.random.uniform(kb, (1, fan_out), jnp.float32, -bound, bound)
    return w, b


def _reference(x, w1, b1, w2, b2, w3, b3):
    x = x.astype(jnp.float32)
    h = x @ w1 + b1
    h = jnp.where(h > 0, h, 0.01 * h)
    h = h @ w2 + b2
    h = jnp.where(h > 0, h, 0.01 * h)
    return h @ w3 + b3


if __name__ == "__main__":
    key = jax.random.PRNGKey(0)
    k_x, k1, k2, k3, k_x2 = jax.random.split(key, 5)

    batch = 16
    input_dim = 32
    hidden_dim = 128   # module default
    output_dim = 8

    x = jax.random.normal(k_x, (batch, input_dim), jnp.float32)
    w1, b1 = _init_linear(k1, input_dim, hidden_dim)
    w2, b2 = _init_linear(k2, hidden_dim, hidden_dim)
    w3, b3 = _init_linear(k3, hidden_dim, output_dim)

    ref = _reference(x, w1, b1, w2, b2, w3, b3)

    # 1) Exact f32 path (bit-level parity with the PyTorch f32 forward).
    out_f32 = jax.block_until_ready(
        lowest_lod_predictor(x, w1, b1, w2, b2, w3, b3, use_bf16=False))
    assert out_f32.shape == (batch, output_dim)
    assert jnp.allclose(out_f32, ref, atol=1e-5, rtol=1e-5), "f32 mismatch"

    # 2) Fast default path: bf16 operands (x cast in wrapper), f32 accumulation.
    out_fast = jax.block_until_ready(
        lowest_lod_predictor(x, w1, b1, w2, b2, w3, b3))
    assert out_fast.shape == (batch, output_dim)
    assert jnp.allclose(out_fast, ref, atol=3e-2, rtol=3e-2), "bf16 mismatch"

    # 3) Non-divisible batch + multi-step grid (exercises padding + >=2 steps).
    batch2 = 200
    x2 = jax.random.normal(k_x2, (batch2, input_dim), jnp.float32)
    ref2 = _reference(x2, w1, b1, w2, b2, w3, b3)
    out2 = jax.block_until_ready(
        lowest_lod_predictor(x2, w1, b1, w2, b2, w3, b3,
                             block_b=128, use_bf16=False))
    assert out2.shape == (batch2, output_dim)
    assert jnp.allclose(out2, ref2, atol=1e-5, rtol=1e-5), "tiled mismatch"

    print("KERNEL_OK")
</pallas_src>

<mosaic_0001>
module attributes {stable_mosaic.version = 11 : i64} {
  func.func @_mlp_kernel(%arg0: i32, %arg1: memref<16x32xf32, #tpu.memory_space<vmem>>, %arg2: memref<32x128xf32, #tpu.memory_space<vmem>>, %arg3: memref<1x128xf32, #tpu.memory_space<vmem>>, %arg4: memref<128x128xf32, #tpu.memory_space<vmem>>, %arg5: memref<1x128xf32, #tpu.memory_space<vmem>>, %arg6: memref<128x8xf32, #tpu.memory_space<vmem>>, %arg7: memref<1x8xf32, #tpu.memory_space<vmem>>, %arg8: memref<16x8xf32, #tpu.memory_space<vmem>>) attributes {dimension_semantics = [#tpu.dimension_semantics<parallel>], iteration_bounds = array<i64: 1>, scalar_prefetch = 0 : i64, scratch_operands = 0 : i64, tpu.core_type = #tpu.core_type<tc>, window_params = [{transform_indices = @transform_0, window_bounds = array<i64: 16, 32>}, {pipeline_mode = #tpu.pipeline_mode<synchronous>, transform_indices = @transform_1, window_bounds = array<i64: 32, 128>}, {pipeline_mode = #tpu.pipeline_mode<synchronous>, transform_indices = @transform_2, window_bounds = array<i64: 1, 128>}, {pipeline_mode = #tpu.pipeline_mode<synchronous>, transform_indices = @transform_3, window_bounds = array<i64: 128, 128>}, {pipeline_mode = #tpu.pipeline_mode<synchronous>, transform_indices = @transform_4, window_bounds = array<i64: 1, 128>}, {pipeline_mode = #tpu.pipeline_mode<synchronous>, transform_indices = @transform_5, window_bounds = array<i64: 128, 8>}, {pipeline_mode = #tpu.pipeline_mode<synchronous>, transform_indices = @transform_6, window_bounds = array<i64: 1, 8>}, {transform_indices = @transform_7, window_bounds = array<i64: 16, 8>}]} {
    %c0 = arith.constant 0 : index
    %c0_0 = arith.constant 0 : index
    %0 = vector.load %arg1[%c0, %c0_0] : memref<16x32xf32, #tpu.memory_space<vmem>>, vector<16x32xf32>
    %c0_1 = arith.constant 0 : index
    %c0_2 = arith.constant 0 : index
    %1 = vector.load %arg2[%c0_1, %c0_2] : memref<32x128xf32, #tpu.memory_space<vmem>>, vector<32x128xf32>
    %cst = arith.constant dense<0.000000e+00> : vector<16x128xf32>
    %2 = tpu.matmul %0, %1, %cst {dimension_numbers = #tpu.dot_dimension_numbers<[1], [0], [0], [1], [0, 0, 1, 1], [], []>} : vector<16x32xf32>, vector<32x128xf32>, vector<16x128xf32> -> vector<16x128xf32>
    %c0_3 = arith.constant 0 : index
    %c0_4 = arith.constant 0 : index
    %3 = vector.load %arg3[%c0_3, %c0_4] : memref<1x128xf32, #tpu.memory_space<vmem>>, vector<1x128xf32>
    %4 = vector.broadcast %3 : vector<1x128xf32> to vector<16x128xf32>
    %5 = arith.addf %2, %4 : vector<16x128xf32>
    %cst_5 = arith.constant 0.00999999977 : f32
    %6 = vector.broadcast %cst_5 : f32 to vector<16x128xf32>
    %7 = arith.mulf %6, %5 : vector<16x128xf32>
    %8 = arith.maximumf %5, %7 : vector<16x128xf32>
    %c0_6 = arith.constant 0 : index
    %c0_7 = arith.constant 0 : index
    %9 = vector.load %arg4[%c0_6, %c0_7] : memref<128x128xf32, #tpu.memory_space<vmem>>, vector<128x128xf32>
    %cst_8 = arith.constant dense<0.000000e+00> : vector<16x128xf32>
    %10 = tpu.matmul %8, %9, %cst_8 {dimension_numbers = #tpu.dot_dimension_numbers<[1], [0], [0], [1], [0, 0, 1, 1], [], []>} : vector<16x128xf32>, vector<128x128xf32>, vector<16x128xf32> -> vector<16x128xf32>
    %c0_9 = arith.constant 0 : index
    %c0_10 = arith.constant 0 : index
    %11 = vector.load %arg5[%c0_9, %c0_10] : memref<1x128xf32, #tpu.memory_space<vmem>>, vector<1x128xf32>
    %12 = vector.broadcast %11 : vector<1x128xf32> to vector<16x128xf32>
    %13 = arith.addf %10, %12 : vector<16x128xf32>
    %cst_11 = arith.constant 0.00999999977 : f32
    %14 = vector.broadcast %cst_11 : f32 to vector<16x128xf32>
    %15 = arith.mulf %14, %13 : vector<16x128xf32>
    %16 = arith.maximumf %13, %15 : vector<16x128xf32>
    %c0_12 = arith.constant 0 : index
    %c0_13 = arith.constant 0 : index
    %17 = vector.load %arg6[%c0_12, %c0_13] : memref<128x8xf32, #tpu.memory_space<vmem>>, vector<128x8xf32>
    %cst_14 = arith.constant dense<0.000000e+00> : vector<16x8xf32>
    %18 = tpu.matmul %16, %17, %cst_14 {dimension_numbers = #tpu.dot_dimension_numbers<[1], [0], [0], [1], [0, 0, 1, 1], [], []>} : vector<16x128xf32>, vector<128x8xf32>, vector<16x8xf32> -> vector<16x8xf32>
    %c0_15 = arith.constant 0 : index
    %c0_16 = arith.constant 0 : index
    %19 = vector.load %arg7[%c0_15, %c0_16] : memref<1x8xf32, #tpu.memory_space<vmem>>, vector<1x8xf32>
    %20 = vector.broadcast %19 : vector<1x8xf32> to vector<16x8xf32>
    %21 = arith.addf %18, %20 : vector<16x8xf32>
    %c0_17 = arith.constant 0 : index
    %c0_18 = arith.constant 0 : index
    %22 = vector.load %arg8[%c0_17, %c0_18] : memref<16x8xf32, #tpu.memory_space<vmem>>, vector<16x8xf32>
    tpu.vector_store %arg8[%c0_17, %c0_18], %21 {strides = array<i32>} : memref<16x8xf32, #tpu.memory_space<vmem>>, vector<16x8xf32>,
    return
  }
  func.func @transform_0(%arg0: i32) -> (i32, i32) {
    %c0_i32 = arith.constant 0 : i32
    %c0_i32_0 = arith.constant 0 : i32
    return %arg0, %c0_i32 : i32, i32
  }
  func.func @transform_1(%arg0: i32) -> (i32, i32) {
    %c0_i32 = arith.constant 0 : i32
    %c0_i32_0 = arith.constant 0 : i32
    %c0_i32_1 = arith.constant 0 : i32
    return %c0_i32, %c0_i32_0 : i32, i32
  }
  func.func @transform_2(%arg0: i32) -> (i32, i32) {
    %c0_i32 = arith.constant 0 : i32
    %c0_i32_0 = arith.constant 0 : i32
    %c0_i32_1 = arith.constant 0 : i32
    return %c0_i32, %c0_i32_0 : i32, i32
  }
  func.func @transform_3(%arg0: i32) -> (i32, i32) {
    %c0_i32 = arith.constant 0 : i32
    %c0_i32_0 = arith.constant 0 : i32
    %c0_i32_1 = arith.constant 0 : i32
    return %c0_i32, %c0_i32_0 : i32, i32
  }
  func.func @transform_4(%arg0: i32) -> (i32, i32) {
    %c0_i32 = arith.constant 0 : i32
    %c0_i32_0 = arith.constant 0 : i32
    %c0_i32_1 = arith.constant 0 : i32
    return %c0_i32, %c0_i32_0 : i32, i32
  }
  func.func @transform_5(%arg0: i32) -> (i32, i32) {
    %c0_i32 = arith.constant 0 : i32
    %c0_i32_0 = arith.constant 0 : i32
    %c0_i32_1 = arith.constant 0 : i32
    return %c0_i32, %c0_i32_0 : i32, i32
  }
  func.func @transform_6(%arg0: i32) -> (i32, i32) {
    %c0_i32 = arith.constant 0 : i32
    %c0_i32_0 = arith.constant 0 : i32
    %c0_i32_1 = arith.constant 0 : i32
    return %c0_i32, %c0_i32_0 : i32, i32
  }
  func.func @transform_7(%arg0: i32) -> (i32, i32) {
    %c0_i32 = arith.constant 0 : i32
    %c0_i32_0 = arith.constant 0 : i32
    return %arg0, %c0_i32 : i32, i32
  }
}

</mosaic_0001>

<bundles_post_ra>
// kernel: lowest_lod_predictor.1
= control target key start
LH: loop header
LB: loop body
LE: loop exit
PB: predicated region body
PF: predicated region fallthrough
CT: control target
= control target key end

     0   :  { %12 = vsyncpa [#allocation3], 0  ;;  %s574_s24 = smov [#allocation2]   ;;  %s748_s0 = inlined_call_operand.vmem [shape: f32[16,32], index: 0, kind: input, shape index: {}]   ;;  %s749_s1 = inlined_call_operand.hbm [shape: f32[32,128], index: 1, kind: input, shape index: {}]   ;;  %s750_s2 = inlined_call_operand.vmem [shape: f32[1,128], index: 2, kind: input, shape index: {}]   ;;  %s751_s3 = inlined_call_operand.vmem [shape: f32[128,128], index: 3, kind: input, shape index: {}]   ;;  %s752_s4 = inlined_call_operand.vmem [shape: f32[1,128], index: 4, kind: input, shape index: {}]   ;;  %s753_s5 = inlined_call_operand.vmem [shape: f32[128,8], index: 5, kind: input, shape index: {}]   ;;  %s754_s6 = inlined_call_operand.vmem [shape: f32[1,8], index: 6, kind: input, shape index: {}]   ;;  %s755_s7 = inlined_call_operand.vmem [shape: f32[16,8], index: 7, kind: output, shape index: {}]  }
   0x1   :  { %s20_s25 = sshll.u32 %s574_s24, 4  ;;  %s550_s28 = scalar_lea.hbm %s749_s1, 512  ;;  %s21_s25 = int_to_ptr.vmem [resolvable:$true] %s20_s25 }
   0x2   :  { %p551_p0 = scmp.ne.s32.totalorder %s749_s1, %s550_s28  ;;  %p554_p1 = scmp.lt.u32.totalorder %s550_s28, %s749_s1 }
   0x4   :  { %p556_p2 = pnand %p554_p1, %p551_p0 }
   0x6   :  { %559 = shalt.err (!%p556_p2)
}
   0x7   :  { %s560_s10 = scalar_lea.vmem %s21_s25, 512  ;;  %p565_p4 = scmp.lt.s32.totalorder %s21_s25, %s21_s25 }
   0x8   :  { %p561_p3 = scmp.ne.s32.totalorder %s21_s25, %s560_s10  ;;  %p566_p5 = scmp.lt.s32.totalorder %s560_s10, %s560_s10 }
   0xa   :  { %p567_p6 = por %p566_p5, %p565_p4 }
   0xc   :  { %p568_p7 = pnand %p567_p6, %p561_p3 }
   0xe   :  { %571 = shalt.err (!%p568_p7)
}
   0xf   :  { %s575_s11 = smov 128   ;;  %s576_s12 = smov 8  }
  0x10   :  { %26 = dma.hbm_to_vmem [thread:$0]  %s749_s1, 512, %s21_s25, [#allocation3], %s575_s11, %s575_s11, %s576_s12  }
  0x11   :  { %572 = dma.done.wait [#allocation3], 512  }
  0x12   :  { %573 = vsyncadd [#allocation3], 4294966784  ;;  %vm53_vm0 = vcmask 261120   ;;  %v42_v0 = vld [vmem:[#allocation2] sm:$0xff]  ;;  %v43_v1 = vld [vmem:[#allocation2 + $0x8] sm:$0xff]  ;;  %vm339_vm1 = vcmask 64512  }
  0x13   :  { %v44_v2 = vld [vmem:[#allocation2 + $0x10] sm:$0xff]  ;;  %v475_v3 = vpack.c.bf16 %v43_v1, %v42_v0  ;;  %v45_v4 = vld [vmem:[#allocation2 + $0x18] sm:$0xff]  ;;  %v40_v5 = vld [vmem:[%s748_s0] sm:$0xff] }
  0x14   :  { %v479_v6 = vpack.c.bf16 %v45_v4, %v44_v2  ;;  %402 = vmatprep.mubr.msk.f32.mxu0 %vm53_vm0, %v40_v5  ;;  %v139_v7 = vld [vmem:[%s751_s3] sm:$0xff]  ;;  %v140_v8 = vld [vmem:[%s751_s3 + $0x8] sm:$0xff]  ;;  %v141_v9 = vld [vmem:[%s751_s3 + $0x10] sm:$0xff] }
  0x15   :  { %476 = vmatprep.subr.bf16.mxu0 %v475_v3  ;;  %v483_v10 = vpack.c.bf16 %v140_v8, %v139_v7  ;;  %v142_v11 = vld [vmem:[%s751_s3 + $0x18] sm:$0xff]  ;;  %v143_v13 = vld [vmem:[%s751_s3 + $0x20] sm:$0xff]  ;;  %v144_v14 = vld [vmem:[%s751_s3 + $0x28] sm:$0xff] }
  0x16   :  { %478 = vmatpush3.bf16.msra.mxu0 %v475_v3  ;;  %v487_v12 = vpack.c.bf16 %v142_v11, %v141_v9  ;;  %v491_v15 = vpack.c.bf16 %v144_v14, %v143_v13  ;;  %v41_v16 = vld [vmem:[%s748_s0 + $0x8] sm:$0xff]  ;;  %v145_v17 = vld [vmem:[%s751_s3 + $0x30] sm:$0xff]  ;;  %v146_v18 = vld [vmem:[%s751_s3 + $0x38] sm:$0xff] }
  0x17   :  { %480 = vmatprep.subr.bf16.mxu0 %v479_v6  ;;  %484 = vmatprep.subr.bf16.mxu1 %v483_v10  ;;  %v495_v19 = vpack.c.bf16 %v146_v18, %v145_v17  ;;  %v147_v20 = vld [vmem:[%s751_s3 + $0x40] sm:$0xff]  ;;  %v148_v21 = vld [vmem:[%s751_s3 + $0x48] sm:$0xff]  ;;  %v149_v23 = vld [vmem:[%s751_s3 + $0x50] sm:$0xff] }
  0x18   :  { %486 = vmatpush3.bf16.msra.mxu1 %v483_v10  ;;  %v499_v22 = vpack.c.bf16 %v148_v21, %v147_v20  ;;  %v150_v24 = vld [vmem:[%s751_s3 + $0x58] sm:$0xff]  ;;  %v151_v26 = vld [vmem:[%s751_s3 + $0x60] sm:$0xff]  ;;  %v152_v27 = vld [vmem:[%s751_s3 + $0x68] sm:$0xff] }
  0x19   :  { %488 = vmatprep.subr.bf16.mxu1 %v487_v12  ;;  %v503_v25 = vpack.c.bf16 %v150_v24, %v149_v23  ;;  %v507_v28 = vpack.c.bf16 %v152_v27, %v151_v26  ;;  %v153_v29 = vld [vmem:[%s751_s3 + $0x70] sm:$0xff]  ;;  %v154_v30 = vld [vmem:[%s751_s3 + $0x78] sm:$0xff]  ;;  %v241_v32 = vld [vmem:[%s753_s5] sm:$0xff] }
  0x1a   :  { %482 = vmatpush3.bf16.msra.mxu0 %v479_v6  ;;  %v511_v31 = vpack.c.bf16 %v154_v30, %v153_v29  ;;  %v242_v33 = vld [vmem:[%s753_s5 + $0x8] sm:$0xff]  ;;  %v243_v34 = vld [vmem:[%s753_s5 + $0x10] sm:$0xff]  ;;  %v244_v36 = vld [vmem:[%s753_s5 + $0x18] sm:$0xff] }
  0x1b   :  { %v515_v35 = vpack.c.bf16 %v242_v33, %v241_v32  ;;  %v519_v37 = vpack.c.bf16 %v244_v36, %v243_v34  ;;  %v245_v38 = vld [vmem:[%s753_s5 + $0x20] sm:$0xff]  ;;  %v246_v39 = vld [vmem:[%s753_s5 + $0x28] sm:$0xff]  ;;  %v247_v41 = vld [vmem:[%s753_s5 + $0x30] sm:$0xff] }
  0x1c   :  { %490 = vmatpush3.bf16.msra.mxu1 %v487_v12  ;;  %v523_v40 = vpack.c.bf16 %v246_v39, %v245_v38  ;;  %v248_v42 = vld [vmem:[%s753_s5 + $0x38] sm:$0xff]  ;;  %v249_v44 = vld [vmem:[%s753_s5 + $0x40] sm:$0xff]  ;;  %v250_v45 = vld [vmem:[%s753_s5 + $0x48] sm:$0xff] }
  0x1d   :  { %403 = vmatmul.mubr.msk.f32.vlgmr.msra.gmra.mrb[0].mxu0 %vm53_vm0, %v41_v16  ;;  %492 = vmatprep.subr.bf16.mxu1 %v491_v15  ;;  %v527_v43 = vpack.c.bf16 %v248_v42, %v247_v41  ;;  %v531_v46 = vpack.c.bf16 %v250_v45, %v249_v44  ;;  %v251_v47 = vld [vmem:[%s753_s5 + $0x50] sm:$0xff]  ;;  %v252_v48 = vld [vmem:[%s753_s5 + $0x58] sm:$0xff]  ;;  %v347_v50 = vld [vmem:[%s750_s2] ss:$0 sm:$0xff] }
  0x1e   :  { %516 = vmatprep.subr.bf16.mxu0 %v515_v35  ;;  %v535_v49 = vpack.c.bf16 %v252_v48, %v251_v47  ;;  %v253_v59 = vld [vmem:[%s753_s5 + $0x60] sm:$0xff]  ;;  %v254_v60 = vld [vmem:[%s753_s5 + $0x68] sm:$0xff]  ;;  %v255_v62 = vld [vmem:[%s753_s5 + $0x70] sm:$0xff] }
  0x1f   :  { %518 = vmatpush3.bf16.msra.mxu0 %v515_v35  ;;  %v539_v61 = vpack.c.bf16 %v254_v60, %v253_v59  ;;  %v256_v63 = vld [vmem:[%s753_s5 + $0x78] sm:$0xff]  ;;  %v350_v1 = vld [vmem:[%s752_s4] ss:$0 sm:$0xff] }
  0x20   :  { %494 = vmatpush3.bf16.msra.mxu1 %v491_v15  ;;  %520 = vmatprep.subr.bf16.mxu0 %v519_v37  ;;  %v543_v0 = vpack.c.bf16 %v256_v63, %v255_v62  ;;  %v351_v10 = vld [vmem:[%s754_s6] ss:$0 sm:$0xff] }
  0x21   :  { %496 = vmatprep.subr.bf16.mxu1 %v495_v19 }
  0x23   :  { %522 = vmatpush3.bf16.msra.mxu0 %v519_v37 }
  0x24   :  { %498 = vmatpush3.bf16.msra.mxu1 %v495_v19  ;;  %524 = vmatprep.subr.bf16.mxu0 %v523_v40 }
  0x25   :  { %500 = vmatprep.subr.bf16.mxu1 %v499_v22 }
  0x27   :  { %526 = vmatpush3.bf16.msra.mxu0 %v523_v40 }
  0x28   :  { %502 = vmatpush3.bf16.msra.mxu1 %v499_v22  ;;  %528 = vmatprep.subr.bf16.mxu0 %v527_v43 }
  0x29   :  { %504 = vmatprep.subr.bf16.mxu1 %v503_v25 }
  0x2b   :  { %530 = vmatpush3.bf16.msra.mxu0 %v527_v43 }
  0x2c   :  { %506 = vmatpush3.bf16.msra.mxu1 %v503_v25  ;;  %532 = vmatprep.subr.bf16.mxu0 %v531_v46 }
  0x2d   :  { %508 = vmatprep.subr.bf16.mxu1 %v507_v28 }
  0x2f   :  { %534 = vmatpush3.bf16.msra.mxu0 %v531_v46 }
  0x30   :  { %510 = vmatpush3.bf16.msra.mxu1 %v507_v28  ;;  %536 = vmatprep.subr.bf16.mxu0 %v535_v49 }
  0x31   :  { %512 = vmatprep.subr.bf16.mxu1 %v511_v31 }
  0x33   :  { %538 = vmatpush3.bf16.msra.mxu0 %v535_v49 }
  0x34   :  { %514 = vmatpush3.bf16.msra.mxu1 %v511_v31  ;;  %540 = vmatprep.subr.bf16.mxu0 %v539_v61 }
  0x37   :  { %542 = vmatpush3.bf16.msra.mxu0 %v539_v61 }
  0x38   :  { %544 = vmatprep.subr.bf16.mxu0 %v543_v0 }
  0x3b   :  { %546 = vmatpush3.bf16.msra.mxu0 %v543_v0 }
  0xf0   :  { %v404_v51 = vpop.f32.mrb[0].mxu0 }
  0xf1   :  { %v132_v52 = vadd.f32 %v404_v51, %v347_v50  ;;  %v126_v53 = vpop.f32.mrb[1].mxu0 }
  0xf2   :  { %v127_v54 = vadd.f32 %v347_v50, %v126_v53 }
  0xf3   :  { %v136_v55 = vmul.f32 0.01, %v132_v52 }
  0xf4   :  { %v135_v56 = vmul.f32 0.01, %v127_v54 }
  0xf5   :  { %v138_v58 = vmax.f32 %v132_v52, %v136_v55 }
  0xf6   :  { %v137_v57 = vmax.f32 %v127_v54, %v135_v56 }
  0xf8   :  { %437 = vmatprep.mubr.f32.mxu1 %v137_v57 }
  0xf9   :  { %438 = vmatmul.mubr.f32.vlgmr.msra.gmra.mrb[0].mxu1 %v138_v58 }
 0x1cc   :  { %v439_v2 = vpop.f32.mrb[0].mxu1 }
 0x1cd   :  { %v234_v3 = vadd.f32 %v439_v2, %v350_v1  ;;  %v228_v4 = vpop.f32.mrb[1].mxu1 }
 0x1ce   :  { %v229_v5 = vadd.f32 %v350_v1, %v228_v4 }
 0x1cf   :  { %v238_v6 = vmul.f32 0.01, %v234_v3 }
 0x1d0   :  { %v237_v7 = vmul.f32 0.01, %v229_v5 }
 0x1d1   :  { %v240_v9 = vmax.f32 %v234_v3, %v238_v6 }
 0x1d2   :  { %v239_v8 = vmax.f32 %v229_v5, %v237_v7 }
 0x1d4   :  { %472 = vmatprep.mubr.f32.mxu0 %v239_v8 }
 0x1d5   :  { %473 = vmatmul.mubr.f32.vlgmr.msra.gmra.mrb[2].mxu0 %v240_v9 }
 0x2a8   :  { %v474_v11 = vpop.f32.mrb[2].mxu0 }
 0x2a9   :  { %v336_v12 = vadd.f32 %v474_v11, %v351_v10  ;;  %v330_v13 = vpop.f32.mrb[3].mxu0 }
 0x2aa   :  { %v331_v14 = vadd.f32 %v351_v10, %v330_v13 }
 0x2ab   :  { %341 = vst.msk [vmem:[%s755_s7 + $0x8] sm:$0xff] %vm339_vm1, %v336_v12 }
 0x2ac   :  { %340 = vst.msk [vmem:[%s755_s7] sm:$0xff] %vm339_vm1, %v331_v14 }
 0x2ad   :  { %346 = vsyncpa [#allocation3], 1 }

</bundles_post_ra>
